<compile_context>
chip_gen: v7x
topology: tpu7x:2x2x1
jax: 0.10.0
libtpu: 0.0.40
codegen_flags: <defaults>
</compile_context>

<pallas_src>
import numpy as np

import jax
import jax.numpy as jnp
from jax.experimental import pallas as pl
from jax.experimental.pallas import tpu as pltpu

LANE = 128     # lane width: last dims padded to multiples of this
SUBLANE = 8    # f32 sublane count: row counts padded to multiples of this


def _pad_to(n, m):
    return n + (-n) % m


def _pick_tile(dim_pad, max_tile=512):
    """Largest tile (preferring 256/512 multiples for v6e/v7x) dividing dim_pad."""
    for t in (512, 256, 128):
        if t <= max_tile and dim_pad % t == 0:
            return t
    return dim_pad


# ----------------------------------------------------------------------------
# Kernel: one (N_out-tile j, N_in-tile k) grid step of a separable QuadConv level
#   acc(R_in, tn) += X(R_in, tk) @ Phi^T(tk, tn)          (bf16 MXU, f32 acc)
#   at last k:  out = tanh( Mix(R_out, R_in) @ acc + bias )          (all f32)
# ----------------------------------------------------------------------------
def _quadconv_level_kernel(mask_ref, x_ref, phiT_ref, mix_ref, bias_ref,
                           o_ref, acc_ref):
    j = pl.program_id(0)
    k = pl.program_id(1)
    nk = pl.num_programs(1)

    @pl.when(k == 0)
    def _init():
        acc_ref[...] = jnp.zeros_like(acc_ref)

    # Compact support of the quadrature filter: skip MXU work for Phi tiles
    # that are identically zero (nonzero-block mask prefetched into SMEM).
    @pl.when(mask_ref[j * nk + k] > 0)
    def _accumulate():
        acc_ref[...] += jnp.dot(x_ref[...], phiT_ref[...],
                                preferred_element_type=jnp.float32)

    # Channel mix + bias + tanh only after the full N_in reduction.
    @pl.when(k == nk - 1)
    def _finalize():
        mixed = jnp.dot(mix_ref[...], acc_ref[...],
                        preferred_element_type=jnp.float32)
        o_ref[...] = jnp.tanh(mixed + bias_ref[...]).astype(o_ref.dtype)


def _run_level(level, x2d):
    """x2d: (R_in, K_pad) bf16 slab -> (R_out, N_pad) slab of level['out_dtype']."""
    r_in, k_pad = x2d.shape
    phiT = level["phiT"]
    assert phiT.shape[0] == k_pad, (phiT.shape, x2d.shape)
    n_pad = phiT.shape[1]
    mix = level["mix"]
    r_out = mix.shape[0]
    tk, tn = level["tk"], level["tn"]
    nj, nk = n_pad // tn, k_pad // tk

    grid_spec = pltpu.PrefetchScalarGridSpec(
        num_scalar_prefetch=1,                  # nonzero-block mask -> SMEM
        grid=(nj, nk),                          # N_out tiles x N_in reduction tiles
        in_specs=[
            pl.BlockSpec((r_in, tk), lambda j, k, m: (0, k)),     # input slab
            pl.BlockSpec((tk, tn), lambda j, k, m: (k, j)),       # Phi^T tile
            pl.BlockSpec((r_out, r_in), lambda j, k, m: (0, 0)),  # channel mix (tiny)
            pl.BlockSpec((r_out, tn), lambda j, k, m: (0, j)),    # bias
        ],
        out_specs=pl.BlockSpec((r_out, tn), lambda j, k, m: (0, j)),
        scratch_shapes=[pltpu.VMEM((r_in, tn), jnp.float32)],     # f32 accumulator
    )
    return pl.pallas_call(
        _quadconv_level_kernel,
        out_shape=jax.ShapeDtypeStruct((r_out, n_pad), level["out_dtype"]),
        grid_spec=grid_spec,
        compiler_params=pltpu.CompilerParams(
            dimension_semantics=("parallel", "arbitrary")),
    )(level["mask"], x2d, phiT, mix, level["bias2d"])


# ----------------------------------------------------------------------------
# Host-side mesh / operator construction (deterministic synthetic weights)
# ----------------------------------------------------------------------------
def make_mesh_levels(side0, num_levels):
    """Uniform [0,1]^2 grid, decimated 2x per dim per level (mesh hierarchy)."""
    levels = []
    for lvl in range(num_levels):
        side = side0 // (2 ** lvl)
        lin = (np.arange(side, dtype=np.float64) + 0.5) / side
        xx, yy = np.meshgrid(lin, lin, indexing="ij")
        pts = np.stack([xx.ravel(), yy.ravel()], axis=-1).astype(np.float32)
        qw = np.full((pts.shape[0],), 1.0 / pts.shape[0], dtype=np.float32)
        levels.append((pts, qw))
    return levels


def quad_filter(points_out, points_in, qw_in, sigma, radius):
    """Phi[j, i] = gaussian_bump(|y_j - x_i|) * quad_weight_i   (N_out, N_in)."""
    d2 = np.sum((points_out[:, None, :] - points_in[None, :, :]) ** 2, axis=-1)
    bump = np.exp(-d2 / (2.0 * sigma ** 2))
    bump = np.where(d2 <= radius ** 2, bump, 0.0)
    return (bump * qw_in[None, :]).astype(np.float32)


def _block_mask(op_f32, tk, tn):
    """1-D int32 nonzero mask over the (j = N-tile, k = K-tile) grid of op (K, N)."""
    k_pad, n_pad = op_f32.shape
    nj, nk = n_pad // tn, k_pad // tk
    mask = np.zeros((nj, nk), np.int32)
    for j in range(nj):
        for k in range(nk):
            blk = op_f32[k * tk:(k + 1) * tk, j * tn:(j + 1) * tn]
            mask[j, k] = np.int32(np.any(blk != 0.0))
    return jnp.asarray(mask.reshape(-1))


def build_encoder_plan(key, channels, mesh_levels, latent_dim, batch):
    n_blocks = len(channels) - 1
    keys = jax.random.split(key, n_blocks + 1)

    levels = []
    ref = {"blocks": []}

    for l in range(n_blocks):
        c_in, c_out = channels[l], channels[l + 1]
        pts_in, qw_in = mesh_levels[l]
        pts_out, _ = mesh_levels[l + 1]
        n_in, n_out = pts_in.shape[0], pts_out.shape[0]
        n_in_pad, n_out_pad = _pad_to(n_in, LANE), _pad_to(n_out, LANE)

        # mesh.reset() equivalent: operators always describe the hierarchy from level 0.
        phi = quad_filter(pts_out, pts_in, qw_in, sigma=0.2, radius=0.5)  # (n_out, n_in)
        w = np.asarray(jax.random.normal(keys[l], (c_in, c_out), jnp.float32))
        w = (w / np.sqrt(c_in)).astype(np.float32)
        b = np.zeros((c_out,), np.float32)

        # Quadrature operator Phi^T, zero-padded to lane multiples (K_pad, N_pad).
        phiT = np.zeros((n_in_pad, n_out_pad), np.float32)
        phiT[:n_in, :n_out] = phi.T
        # Batch-folded channel mix on the (B*C) row dim: kron(I_B, W^T) (tiny).
        mix = np.kron(np.eye(batch, dtype=np.float32), w.T).astype(np.float32)
        # Bias per (batch, channel) row, only over real N_out columns so that
        # padded columns of the slab stay exactly zero.
        bias2d = np.zeros((batch * c_out, n_out_pad), np.float32)
        bias2d[:, :n_out] = np.tile(b, batch)[:, None]

        tk, tn = _pick_tile(n_in_pad), _pick_tile(n_out_pad)
        levels.append(dict(
            phiT=jnp.asarray(phiT, jnp.bfloat16),
            mix=jnp.asarray(mix, jnp.float32),
            bias2d=jnp.asarray(bias2d, jnp.float32),
            mask=_block_mask(phiT, tk, tn),
            tk=tk, tn=tn,
            out_dtype=jnp.bfloat16,
        ))
        ref["blocks"].append((phi, w, b))

    # Latent head: channel-first flatten of the last level, then linear + tanh.
    c_last = channels[-1]
    n_last = mesh_levels[n_blocks][0].shape[0]
    n_last_pad = _pad_to(n_last, LANE)
    d_flat = c_last * n_last
    latent_pad = _pad_to(latent_dim, LANE)
    r_lat = _pad_to(batch, SUBLANE)          # sublane-dense latent store

    w_lat = np.asarray(jax.random.normal(keys[-1], (d_flat, latent_dim), jnp.float32))
    w_lat = (w_lat / np.sqrt(d_flat)).astype(np.float32)
    b_lat = np.zeros((latent_dim,), np.float32)

    # Embed w_lat into the lane-padded channel-first flatten of the last slab.
    w_pad = np.zeros((c_last, n_last_pad, latent_pad), np.float32)
    w_pad[:, :n_last, :latent_dim] = w_lat.reshape(c_last, n_last, latent_dim)
    w_pad = w_pad.reshape(c_last * n_last_pad, latent_pad)

    bias_lat2d = np.zeros((r_lat, latent_pad), np.float32)
    bias_lat2d[:, :latent_dim] = b_lat[None, :]

    tk, tn = _pick_tile(c_last * n_last_pad), _pick_tile(latent_pad)
    latent = dict(
        phiT=jnp.asarray(w_pad, jnp.bfloat16),
        mix=jnp.asarray(np.eye(r_lat, dtype=np.float32)),  # identity "mix"
        bias2d=jnp.asarray(bias_lat2d, jnp.float32),
        mask=_block_mask(w_pad, tk, tn),
        tk=tk, tn=tn,
        out_dtype=jnp.float32,
    )
    ref["latent"] = (w_lat, b_lat)

    return dict(levels=levels, latent=latent, ref=ref,
                batch=batch, latent_dim=latent_dim,
                c0=channels[0],
                n0=mesh_levels[0][0].shape[0],
                n0_pad=_pad_to(mesh_levels[0][0].shape[0], LANE))


# ----------------------------------------------------------------------------
# Forward pass (== quadconvEncoder.forward)
# ----------------------------------------------------------------------------
def quadconv_encoder_forward(plan, X):
    """X: (B, C0, N0) channel-first point-cloud features -> (B, latent_dim)."""
    # mesh.reset(): operators always describe the full hierarchy from level 0,
    # so every call traverses it from scratch (stateless).
    B, c0, n0 = X.shape
    assert B == plan["batch"] and c0 == plan["c0"] and n0 == plan["n0"]

    # Batch-folded, channel-first 2-D slab; streamed in bf16 (halves DMA bytes),
    # lane-padded so every block and every store is lane-dense.
    h = X.reshape(B * c0, n0).astype(jnp.bfloat16)
    h = jnp.pad(h, ((0, 0), (0, plan["n0_pad"] - n0)))

    for level in plan["levels"]:
        h = _run_level(level, h)            # (B*C_out, N_out_pad) bf16

    # Channel-first flatten (matches PyTorch flatten order); pad batch rows to
    # a sublane multiple so the latent store is unmasked.
    h = h.reshape(B, -1)
    r_lat = plan["latent"]["mix"].shape[0]
    h = jnp.pad(h, ((0, r_lat - B), (0, 0)))
    z = _run_level(plan["latent"], h)       # (r_lat, latent_pad) f32
    return z[:B, :plan["latent_dim"]]


# ----------------------------------------------------------------------------
# Pure-numpy reference (unfused f64 math) for the correctness check.
# ----------------------------------------------------------------------------
def reference_forward(X, ref_params):
    x = np.asarray(X, np.float64)                   # (B, C0, N0)
    for phi, w, b in ref_params["blocks"]:
        xw = np.einsum("bci,cd->bdi", x, w)         # channel mix
        y = np.einsum("ji,bdi->bdj", phi, xw)       # quadrature
        x = np.tanh(y + b[None, :, None])
    w_lat, b_lat = ref_params["latent"]
    flat = x.reshape(x.shape[0], -1)                # channel-first flatten
    return np.tanh(flat @ w_lat + b_lat[None, :])


if __name__ == "__main__":
    # Small, forward-consistent shapes: B=2, C0=4, 8x8=64 level-0 mesh points,
    # channel schedule 4 -> 8 -> 16, mesh 64 -> 16 -> 4 points, latent=32.
    B = 2
    channels = [4, 8, 16]
    side0 = 8
    latent_dim = 32

    mesh_levels = make_mesh_levels(side0, num_levels=len(channels))
    key = jax.random.PRNGKey(0)
    k_param, k_x = jax.random.split(key)
    plan = build_encoder_plan(k_param, channels, mesh_levels, latent_dim, batch=B)

    X = jax.random.normal(k_x, (B, channels[0], side0 * side0), jnp.float32)

    z = quadconv_encoder_forward(plan, X)
    z = jax.block_until_ready(z)

    assert z.shape == (B, latent_dim), z.shape
    assert bool(jnp.all(jnp.isfinite(z)))

    z_ref = reference_forward(np.asarray(X), plan["ref"])
    np.testing.assert_allclose(np.asarray(z), z_ref, rtol=3e-2, atol=5e-3)

    print("KERNEL_OK")
</pallas_src>

<mosaic_0001>
module attributes {stable_mosaic.version = 11 : i64} {
  func.func @_quadconv_level_kernel(%arg0: i32, %arg1: i32, %arg2: memref<1xi32, #tpu.memory_space<smem>>, %arg3: memref<8x128xbf16, #tpu.memory_space<vmem>>, %arg4: memref<128x128xbf16, #tpu.memory_space<vmem>>, %arg5: memref<16x8xf32, #tpu.memory_space<vmem>>, %arg6: memref<16x128xf32, #tpu.memory_space<vmem>>, %arg7: memref<16x128xbf16, #tpu.memory_space<vmem>>, %arg8: memref<8x128xf32, #tpu.memory_space<vmem>>) attributes {dimension_semantics = [#tpu.dimension_semantics<parallel>, #tpu.dimension_semantics<arbitrary>], iteration_bounds = array<i64: 1, 1>, scalar_prefetch = 1 : i64, scratch_operands = 1 : i64, tpu.core_type = #tpu.core_type<tc>, window_params = [{transform_indices = @transform_0, window_bounds = array<i64: 8, 128>}, {transform_indices = @transform_1, window_bounds = array<i64: 128, 128>}, {pipeline_mode = #tpu.pipeline_mode<synchronous>, transform_indices = @transform_2, window_bounds = array<i64: 16, 8>}, {transform_indices = @transform_3, window_bounds = array<i64: 16, 128>}, {transform_indices = @transform_4, window_bounds = array<i64: 16, 128>}]} {
    %c0_i32 = arith.constant 0 : i32
    %0 = arith.cmpi eq, %arg1, %c0_i32 : i32
    %1 = arith.extui %0 : i1 to i32
    %c0_i32_0 = arith.constant 0 : i32
    %2 = arith.cmpi ne, %1, %c0_i32_0 : i32
    scf.if %2 {
      %cst = arith.constant 0.000000e+00 : f32
      %13 = vector.broadcast %cst : f32 to vector<8x128xf32>
      %c0 = arith.constant 0 : index
      %c0_5 = arith.constant 0 : index
      %14 = vector.load %arg8[%c0, %c0_5] : memref<8x128xf32, #tpu.memory_space<vmem>>, vector<8x128xf32>
      tpu.vector_store %arg8[%c0, %c0_5], %13 {strides = array<i32>} : memref<8x128xf32, #tpu.memory_space<vmem>>, vector<8x128xf32>,
    } else {
    }
    %c1_i32 = arith.constant 1 : i32
    %3 = arith.muli %arg0, %c1_i32 : i32
    %4 = arith.addi %3, %arg1 : i32
    %5 = arith.index_cast %4 : i32 to index
    %6 = memref.load %arg2[%5] : memref<1xi32, #tpu.memory_space<smem>>
    %c0_i32_1 = arith.constant 0 : i32
    %7 = arith.cmpi sgt, %6, %c0_i32_1 : i32
    %8 = arith.extui %7 : i1 to i32
    %c0_i32_2 = arith.constant 0 : i32
    %9 = arith.cmpi ne, %8, %c0_i32_2 : i32
    scf.if %9 {
      %c0 = arith.constant 0 : index
      %c0_5 = arith.constant 0 : index
      %13 = vector.load %arg8[%c0, %c0_5] : memref<8x128xf32, #tpu.memory_space<vmem>>, vector<8x128xf32>
      %c0_6 = arith.constant 0 : index
      %c0_7 = arith.constant 0 : index
      %14 = vector.load %arg3[%c0_6, %c0_7] : memref<8x128xbf16, #tpu.memory_space<vmem>>, vector<8x128xbf16>
      %c0_8 = arith.constant 0 : index
      %c0_9 = arith.constant 0 : index
      %15 = vector.load %arg4[%c0_8, %c0_9] : memref<128x128xbf16, #tpu.memory_space<vmem>>, vector<128x128xbf16>
      %cst = arith.constant dense<0.000000e+00> : vector<8x128xf32>
      %16 = tpu.matmul %14, %15, %cst {dimension_numbers = #tpu.dot_dimension_numbers<[1], [0], [0], [1], [0, 0, 1, 1], [], []>} : vector<8x128xbf16>, vector<128x128xbf16>, vector<8x128xf32> -> vector<8x128xf32>
      %17 = arith.addf %13, %16 : vector<8x128xf32>
      %c0_10 = arith.constant 0 : index
      %c0_11 = arith.constant 0 : index
      %18 = vector.load %arg8[%c0_10, %c0_11] : memref<8x128xf32, #tpu.memory_space<vmem>>, vector<8x128xf32>
      tpu.vector_store %arg8[%c0_10, %c0_11], %17 {strides = array<i32>} : memref<8x128xf32, #tpu.memory_space<vmem>>, vector<8x128xf32>,
    } else {
    }
    %c0_i32_3 = arith.constant 0 : i32
    %10 = arith.cmpi eq, %arg1, %c0_i32_3 : i32
    %11 = arith.extui %10 : i1 to i32
    %c0_i32_4 = arith.constant 0 : i32
    %12 = arith.cmpi ne, %11, %c0_i32_4 : i32
    scf.if %12 {
      %c0 = arith.constant 0 : index
      %c0_5 = arith.constant 0 : index
      %13 = vector.load %arg5[%c0, %c0_5] : memref<16x8xf32, #tpu.memory_space<vmem>>, vector<16x8xf32>
      %c0_6 = arith.constant 0 : index
      %c0_7 = arith.constant 0 : index
      %14 = vector.load %arg8[%c0_6, %c0_7] : memref<8x128xf32, #tpu.memory_space<vmem>>, vector<8x128xf32>
      %cst = arith.constant dense<0.000000e+00> : vector<16x128xf32>
      %15 = tpu.matmul %13, %14, %cst {dimension_numbers = #tpu.dot_dimension_numbers<[1], [0], [0], [1], [0, 0, 1, 1], [], []>} : vector<16x8xf32>, vector<8x128xf32>, vector<16x128xf32> -> vector<16x128xf32>
      %c0_8 = arith.constant 0 : index
      %c0_9 = arith.constant 0 : index
      %16 = vector.load %arg6[%c0_8, %c0_9] : memref<16x128xf32, #tpu.memory_space<vmem>>, vector<16x128xf32>
      %17 = arith.addf %15, %16 : vector<16x128xf32>
      %18 = math.tanh %17 : vector<16x128xf32>
      %19 = arith.truncf %18 : vector<16x128xf32> to vector<16x128xbf16>
      %c0_10 = arith.constant 0 : index
      %c0_11 = arith.constant 0 : index
      %20 = vector.load %arg7[%c0_10, %c0_11] : memref<16x128xbf16, #tpu.memory_space<vmem>>, vector<16x128xbf16>
      tpu.vector_store %arg7[%c0_10, %c0_11], %19 {strides = array<i32>} : memref<16x128xbf16, #tpu.memory_space<vmem>>, vector<16x128xbf16>,
    } else {
    }
    return
  }
  func.func @transform_0(%arg0: i32, %arg1: i32, %arg2: memref<1xi32, #tpu.memory_space<smem>>) -> (i32, i32) {
    %c0_i32 = arith.constant 0 : i32
    %c0_i32_0 = arith.constant 0 : i32
    return %c0_i32, %arg1 : i32, i32
  }
  func.func @transform_1(%arg0: i32, %arg1: i32, %arg2: memref<1xi32, #tpu.memory_space<smem>>) -> (i32, i32) {
    %c0_i32 = arith.constant 0 : i32
    return %arg1, %arg0 : i32, i32
  }
  func.func @transform_2(%arg0: i32, %arg1: i32, %arg2: memref<1xi32, #tpu.memory_space<smem>>) -> (i32, i32) {
    %c0_i32 = arith.constant 0 : i32
    %c0_i32_0 = arith.constant 0 : i32
    %c0_i32_1 = arith.constant 0 : i32
    return %c0_i32, %c0_i32_0 : i32, i32
  }
  func.func @transform_3(%arg0: i32, %arg1: i32, %arg2: memref<1xi32, #tpu.memory_space<smem>>) -> (i32, i32) {
    %c0_i32 = arith.constant 0 : i32
    %c0_i32_0 = arith.constant 0 : i32
    return %c0_i32, %arg0 : i32, i32
  }
  func.func @transform_4(%arg0: i32, %arg1: i32, %arg2: memref<1xi32, #tpu.memory_space<smem>>) -> (i32, i32) {
    %c0_i32 = arith.constant 0 : i32
    %c0_i32_0 = arith.constant 0 : i32
    return %c0_i32, %arg0 : i32, i32
  }
}

</mosaic_0001>

<bundles_post_ra>
// kernel: tpu_custom_call.1
= control target key start
LH: loop header
LB: loop body
LE: loop exit
PB: predicated region body
PF: predicated region fallthrough
CT: control target
= control target key end

     0   :  { %11 = vsyncpa [#allocation6], 0  ;;  %s482_s0 = inlined_call_operand.<no memory space> [shape: s32[1], index: 0, kind: input, shape index: {}]   ;;  %s483_s1 = inlined_call_operand.vmem [shape: bf16[8,128], index: 1, kind: input, shape index: {}]   ;;  %s484_s2 = inlined_call_operand.hbm [shape: bf16[128,128], index: 2, kind: input, shape index: {}]   ;;  %s485_s3 = inlined_call_operand.vmem [shape: f32[16,8], index: 3, kind: input, shape index: {}]   ;;  %s486_s4 = inlined_call_operand.vmem [shape: f32[16,128], index: 4, kind: input, shape index: {}]   ;;  %s487_s5 = inlined_call_operand.hbm [shape: bf16[16,128], index: 5, kind: output, shape index: {}]  }
   0x1   :  { %12 = vsyncpa [#allocation7], 0  ;;  %s397_s18 = smov [#allocation5]   ;;  %s349_s22 = scalar_lea.hbm %s484_s2, 1024 }
   0x2   :  { %s20_s19 = sshll.u32 %s397_s18, 4  ;;  %p350_p0 = scmp.ne.s32.totalorder %s484_s2, %s349_s22  ;;  %s21_s19 = int_to_ptr.vmem [resolvable:$true] %s20_s19 }
   0x3   :  { %p353_p1 = scmp.lt.u32.totalorder %s349_s22, %s484_s2 }
   0x5   :  { %p355_p2 = pnand %p353_p1, %p350_p0 }
   0x7   :  { %358 = shalt.err (!%p355_p2)
}
   0x8   :  { %s359_s27 = scalar_lea.vmem %s21_s19, 1024  ;;  %p364_p4 = scmp.lt.s32.totalorder %s21_s19, %s21_s19 }
   0x9   :  { %p360_p3 = scmp.ne.s32.totalorder %s21_s19, %s359_s27  ;;  %p365_p5 = scmp.lt.s32.totalorder %s359_s27, %s359_s27 }
   0xb   :  { %p366_p6 = por %p365_p5, %p364_p4 }
   0xd   :  { %p367_p7 = pnand %p366_p6, %p360_p3 }
   0xf   :  { %370 = shalt.err (!%p367_p7)
}
  0x10   :  { %s398_s28 = smov 64   ;;  %s399_s29 = smov 4  }
  0x11   :  { %26 = dma.hbm_to_vmem [thread:$0]  %s484_s2, 1024, %s21_s19, [#allocation6], %s398_s28, %s398_s28, %s399_s29  }
  0x12   :  { %393 = dma.done.wait [#allocation6], 1024  }
  0x13   :  { %394 = vsyncadd [#allocation6], 4294966272  ;;  %v400_v0 = vmov 0.0   ;;  %p273_p8 = scmp.le.s32.totalorder %s482_s0, 0 }
  0x14   :  { %39 = vst [vmem:[#allocation2] sm:$0xff] %v400_v0  ;;  %v337_v1 = vld [vmem:[#allocation5] sm:$0xff] (!%p273_p8)   ;;  %v401_v2 = vmov (!%p273_p8), 0.0   ;;  %v338_v3 = vld [vmem:[#allocation5 + $0x8] sm:$0xff] (!%p273_p8)   ;;  %vm402_vm0 = vmmov (!%p273_p8), 0   ;;  %v339_v4 = vld [vmem:[#allocation5 + $0x10] sm:$0xff] (!%p273_p8)  }
  0x15   :  { %45 = sbr.rel (%p273_p8) target bundleno = 268 (0x10c), region = 29  ;;  %305 = vmatprep.subr.bf16.mxu0 (!%p273_p8), %v401_v2  ;;  %321 = vmatprep.mubr.msk.bf16.mxu0 (!%p273_p8), %vm402_vm0, %v401_v2  ;;  %v340_v5 = vld [vmem:[#allocation5 + $0x18] sm:$0xff] (!%p273_p8)   ;;  %v341_v6 = vld [vmem:[#allocation5 + $0x20] sm:$0xff] (!%p273_p8)   ;;  %v342_v7 = vld [vmem:[#allocation5 + $0x28] sm:$0xff] (!%p273_p8)  }
  0x16   :  { %306 = vmatpush3.bf16.msra.mxu0 (!%p273_p8), %v337_v1  ;;  %v343_v8 = vld [vmem:[#allocation5 + $0x30] sm:$0xff] (!%p273_p8)   ;;  %v344_v9 = vld [vmem:[#allocation5 + $0x38] sm:$0xff] (!%p273_p8)  }
  0x17   :  { %307 = vmatprep.subr.bf16.mxu0 (!%p273_p8), %v401_v2  ;;  %v47_v10 = vld [vmem:[%s483_s1] sm:$0xf] (!%p273_p8) }
  0x1a   :  { %308 = vmatpush3.bf16.msra.mxu0 (!%p273_p8), %v338_v3 }
  0x1b   :  { %309 = vmatprep.subr.bf16.mxu0 (!%p273_p8), %v401_v2  ;;  %v46_v11 = vld [vmem:[#allocation2] sm:$0xff] (!%p273_p8) }
  0x1e   :  { %310 = vmatpush3.bf16.msra.mxu0 %v339_v4 }
  0x1f   :  { %311 = vmatprep.subr.bf16.mxu0 %v401_v2 }
  0x22   :  { %312 = vmatpush3.bf16.msra.mxu0 %v340_v5 }
  0x23   :  { %313 = vmatprep.subr.bf16.mxu0 %v401_v2 }
  0x26   :  { %314 = vmatpush3.bf16.msra.mxu0 %v341_v6 }
  0x27   :  { %315 = vmatprep.subr.bf16.mxu0 %v401_v2 }
  0x2a   :  { %316 = vmatpush3.bf16.msra.mxu0 %v342_v7 }
  0x2b   :  { %317 = vmatprep.subr.bf16.mxu0 %v401_v2 }
  0x2e   :  { %318 = vmatpush3.bf16.msra.mxu0 %v343_v8 }
  0x2f   :  { %319 = vmatprep.subr.bf16.mxu0 %v401_v2 }
  0x32   :  { %320 = vmatpush3.bf16.msra.mxu0 %v344_v9 }
  0x35   :  { %322 = vmatmul.mubr.bf16.vlgmr.msra.gmra.mrb[0].mxu0 %v47_v10 }
 0x108   :  { %v146_v12 = vpop.f32.mrb[0].mxu0 }
 0x109   :  { %v152_v13 = vadd.f32 %v146_v12, %v46_v11  ;;  %v323_v14 = vpop.f32.mrb[1].mxu0 }
 0x10a   :  { %v149_v15 = vpop.f32.mrb[2].mxu0 }
 0x10b   :  { %153 = vst [vmem:[#allocation2] sm:$0xff] %v152_v13  ;;  %v324_v16 = vpop.f32.mrb[3].mxu0 }
 0x10c PF:  { %v157_v18 = vld [vmem:[%s485_s3] sm:$0xff]  ;;  %vm162_vm1 = vcmask 64512   ;;  %v158_v19 = vld [vmem:[%s485_s3 + $0x8] sm:$0xff]  ;;  %s403_s16 = smov [#allocation8]  }
 0x10d   :  { %327 = vmatprep.mubr.msk.f32.mxu0 %vm162_vm1, %v157_v18  ;;  %v161_v20 = vld [vmem:[%s486_s4 + $0x8] sm:$0xff]  ;;  %v160_v21 = vld [vmem:[%s486_s4] sm:$0xff]  ;;  %s261_s3 = sshll.u32 %s403_s16, 4  ;;  %s262_s3 = int_to_ptr.vmem [resolvable:$true] %s261_s3 }
 0x10e   :  { %s371_s17 = scalar_lea.vmem %s262_s3, 128  ;;  %p376_p10 = scmp.lt.s32.totalorder %s262_s3, %s262_s3 }
 0x10f   :  { %p372_p9 = scmp.ne.s32.totalorder %s262_s3, %s371_s17  ;;  %p377_p11 = scmp.lt.s32.totalorder %s371_s17, %s371_s17 }
 0x111   :  { %p378_p12 = por %p377_p11, %p376_p10 }
 0x112   :  { %v159_v17 = vld [vmem:[#allocation2] sm:$0xff] }
 0x113   :  { %325 = vmatprep.subr.mxu0 %v159_v17  ;;  %p379_p13 = pnand %p378_p12, %p372_p9 }
 0x114   :  { %326 = vmatpush3.msra.mxu0 %v159_v17 }
 0x115   :  { %328 = vmatmul.mubr.msk.f32.vlgmr.msra.gmra.mrb[0].mxu0 %vm162_vm1, %v158_v19 }
 0x1e8   :  { %v329_v22 = vpop.f32.mrb[0].mxu0 }
 0x1e9   :  { %v241_v23 = vadd.f32 %v329_v22, %v161_v20  ;;  %v235_v24 = vpop.f32.mrb[1].mxu0 }
 0x1ea   :  { %v236_v25 = vadd.f32 %v235_v24, %v160_v21 }
 0x1eb   :  { %345 = vtanh.f32 %v241_v23 }
 0x1ec   :  { %347 = vtanh.f32 %v236_v25 }
 0x1f5   :  { %v346_v26 = vpop.eup %345 }
 0x1f6   :  { %v348_v27 = vpop.eup %347 }
 0x1f7   :  { %v291_v28 = vpack.c.bf16 %v346_v26, %v348_v27 }
 0x1f9   :  { %292 = vst [vmem:[#allocation8] sm:$0xff] %v291_v28  }
 0x1fa   :  { %382 = shalt.err (!%p379_p13)
}
 0x1fb   :  { %s383_s19 = scalar_lea.hbm %s487_s5, 128 }
 0x1fc   :  { %p384_p0 = scmp.ne.s32.totalorder %s487_s5, %s383_s19  ;;  %p387_p1 = scmp.lt.u32.totalorder %s383_s19, %s487_s5 }
 0x1fe   :  { %p389_p2 = pnand %p387_p1, %p384_p0 }
 0x200   :  { %392 = shalt.err (!%p389_p2)
}
 0x201   :  { %267 = dma.vmem_to_hbm [thread:$0]  %s262_s3, 128, %s487_s5, [#allocation7], %s398_s28, %s398_s28, %s399_s29  }
 0x202   :  { %395 = dma.done.wait [#allocation7], 128  }
 0x203   :  { %396 = vsyncadd [#allocation7], 4294967168 }
 0x204   :  { %271 = vsyncpa [#allocation6], 1 }
 0x205   :  { %272 = vsyncpa [#allocation7], 1 }

</bundles_post_ra>
